<compile_context>
chip_gen: v6e
topology: v6e:2x2x1
jax: 0.10.0
libtpu: 0.0.40
codegen_flags: <defaults>
</compile_context>

<pallas_src>
import functools
import math

import jax
import jax.numpy as jnp
import numpy as np
from jax import lax
from jax.experimental import pallas as pl
from jax.experimental.pallas import tpu as pltpu

_MASK_VAL = -1000000.0   # matches reference masked_softmax
_KPAD_VAL = -1.0e30      # padded key columns: excluded from softmax support


def _round_up(x, m):
    return ((x + m - 1) // m) * m


def _flash_step(s, v_ref, o_ref, m_scr, l_scr, acc_scr):
    """One online-softmax update with f32 scores `s` of shape (tq, tk)."""
    kv = pl.program_id(2)

    @pl.when(kv == 0)
    def _():
        m_scr[...] = jnp.full_like(m_scr, -jnp.inf)
        l_scr[...] = jnp.zeros_like(l_scr)
        acc_scr[...] = jnp.zeros_like(acc_scr)

    m_prev = m_scr[...]
    m_new = jnp.maximum(m_prev, jnp.max(s, axis=-1, keepdims=True))
    alpha = jnp.exp(m_prev - m_new)
    p = jnp.exp(s - m_new)
    l_scr[...] = alpha * l_scr[...] + jnp.sum(p, axis=-1, keepdims=True)
    acc_scr[...] = alpha * acc_scr[...] + jnp.dot(
        p.astype(v_ref.dtype), v_ref[...], preferred_element_type=jnp.float32)
    m_scr[...] = m_new

    @pl.when(kv == pl.num_programs(2) - 1)
    def _():
        # Exact reciprocal: (tq, 1) elements, negligible cost; avoids the
        # ~1e-3 relative error of the approx EUP path.
        o_ref[...] = (acc_scr[...] *
                      pl.reciprocal(l_scr[...], approx=False)).astype(o_ref.dtype)


def _scores(q_ref, k_ref, scale):
    # Fold 1/sqrt(D) into q (tq*D mults instead of tq*tk). Python-float scale
    # is weakly typed, so bf16 operands stay bf16 for the MXU.
    q = q_ref[...] * scale
    return lax.dot_general(
        q, k_ref[...], dimension_numbers=(((1,), (1,)), ((), ())),
        preferred_element_type=jnp.float32)


def _attn_kernel_nomask(q_ref, k_ref, v_ref, o_ref, m_scr, l_scr, acc_scr, *,
                        scale):
    s = _scores(q_ref, k_ref, scale)
    _flash_step(s, v_ref, o_ref, m_scr, l_scr, acc_scr)


def _attn_kernel_vl_scalar(vl_smem, q_ref, k_ref, v_ref, o_ref,
                           m_scr, l_scr, acc_scr, *, scale, tk, k_actual,
                           k_padded):
    # Per-batch valid length, read as a scalar from SMEM (scalar prefetch).
    b = pl.program_id(0)
    kv = pl.program_id(2)
    vl_b = vl_smem[b]

    s = _scores(q_ref, k_ref, scale)
    col = kv * tk + lax.broadcasted_iota(jnp.int32, s.shape, 1)
    s = jnp.where(col < vl_b, s, jnp.float32(_MASK_VAL))
    if k_padded != k_actual:                       # static: only if K was padded
        s = jnp.where(col < k_actual, s, jnp.float32(_KPAD_VAL))
    _flash_step(s, v_ref, o_ref, m_scr, l_scr, acc_scr)


def _attn_kernel_vl_rows(q_ref, k_ref, v_ref, vl_ref, o_ref,
                         m_scr, l_scr, acc_scr, *, scale, tk, k_actual,
                         k_padded):
    # Per-query-row valid length: vl_ref is a (tq, 1) int32 block.
    kv = pl.program_id(2)
    s = _scores(q_ref, k_ref, scale)
    col = kv * tk + lax.broadcasted_iota(jnp.int32, s.shape, 1)
    s = jnp.where(col < vl_ref[...], s, jnp.float32(_MASK_VAL))
    if k_padded != k_actual:
        s = jnp.where(col < k_actual, s, jnp.float32(_KPAD_VAL))
    _flash_step(s, v_ref, o_ref, m_scr, l_scr, acc_scr)


def dot_product_attention(queries, keys, values, valid_lens=None, *,
                          tq_max=256, tk_max=None):
    """Pallas TPU implementation of DotProductAttention.forward (eval mode)."""
    B, Q, D = queries.shape
    _, K, _ = keys.shape
    _, _, V = values.shape
    scale = 1.0 / math.sqrt(D)

    # dtype-aware sublane rounding: 8 (f32) / 16 (bf16) / 32 (8-bit).
    itemsize = jnp.dtype(queries.dtype).itemsize
    sub = max(8, 32 // max(itemsize, 1))
    if tk_max is None:
        tk_max = 512 if itemsize <= 2 else 256
    # NOTE: on v5e (4x128^2 MXU) tq_max=128 already fills the MXU M side; pass
    # tq_max=128 there if tuning per-chip.

    tq = min(_round_up(tq_max, sub), _round_up(Q, sub))
    Qp = _round_up(Q, tq)
    tk = min(_round_up(tk_max, sub), _round_up(K, sub))
    Kp = _round_up(K, tk)

    if Qp != Q:
        queries = jnp.pad(queries, ((0, 0), (0, Qp - Q), (0, 0)))
    if Kp != K:
        keys = jnp.pad(keys, ((0, 0), (0, Kp - K), (0, 0)))
        values = jnp.pad(values, ((0, 0), (0, Kp - K), (0, 0)))

    grid = (B, Qp // tq, Kp // tk)

    # Leading batch dim squeezed (None) -> kernel refs are 2-D (sublane, lane).
    # index_maps take *_ so they also accept the scalar-prefetch ref.
    q_spec = pl.BlockSpec((None, tq, D), lambda b, qi, ki, *_: (b, qi, 0))
    k_spec = pl.BlockSpec((None, tk, D), lambda b, qi, ki, *_: (b, ki, 0))
    v_spec = pl.BlockSpec((None, tk, V), lambda b, qi, ki, *_: (b, ki, 0))
    o_spec = pl.BlockSpec((None, tq, V), lambda b, qi, ki, *_: (b, qi, 0))

    scratch = [pltpu.VMEM((tq, 1), jnp.float32),     # running max m
               pltpu.VMEM((tq, 1), jnp.float32),     # running sum l
               pltpu.VMEM((tq, V), jnp.float32)]     # running accumulator

    # Explicit scoped-VMEM budget: per-step footprint (double-buffered blocks
    # + scratch) with generous headroom, clamped to [32 MiB, 64 MiB] so it
    # raises v5e's 16 MiB default yet stays under v7x's 64 MiB physical VMEM.
    def _bytes(shape, dt):
        return int(np.prod(shape)) * jnp.dtype(dt).itemsize
    est = 2 * (_bytes((tq, D), queries.dtype) + _bytes((tk, D), keys.dtype)
               + _bytes((tk, V), values.dtype) + _bytes((tq, V), queries.dtype)
               + _bytes((tq, 1), jnp.int32))
    est += 2 * _bytes((tq, 1), jnp.float32) + _bytes((tq, V), jnp.float32)
    vmem_limit = int(min(64 * 2**20, max(32 * 2**20, 4 * est)))

    cparams = pltpu.CompilerParams(
        dimension_semantics=("parallel", "parallel", "arbitrary"),
        vmem_limit_bytes=vmem_limit)
    out_shape = jax.ShapeDtypeStruct((B, Qp, V), queries.dtype)

    if valid_lens is None and Kp == K:
        out = pl.pallas_call(
            functools.partial(_attn_kernel_nomask, scale=scale),
            out_shape=out_shape,
            grid_spec=pltpu.PrefetchScalarGridSpec(
                num_scalar_prefetch=0, grid=grid,
                in_specs=[q_spec, k_spec, v_spec],
                out_specs=o_spec,
                scratch_shapes=scratch),
            compiler_params=cparams,
        )(queries, keys, values)
    else:
        # valid_lens None with padded K reuses the scalar-masked kernel with
        # vl = K (padded columns masked, real columns untouched).
        vl = (jnp.full((B,), K, dtype=jnp.int32) if valid_lens is None
              else jnp.asarray(valid_lens))
        if vl.ndim == 1:
            # Per-batch length via scalar prefetch (SMEM): no HBM broadcast
            # array, no extra DMA stream.
            vl = vl.astype(jnp.int32)
            out = pl.pallas_call(
                functools.partial(_attn_kernel_vl_scalar, scale=scale,
                                  tk=tk, k_actual=K, k_padded=Kp),
                out_shape=out_shape,
                grid_spec=pltpu.PrefetchScalarGridSpec(
                    num_scalar_prefetch=1, grid=grid,
                    in_specs=[q_spec, k_spec, v_spec],
                    out_specs=o_spec,
                    scratch_shapes=scratch),
                compiler_params=cparams,
            )(vl, queries, keys, values)
        else:
            vl = vl.astype(jnp.int32)
            if Qp != Q:                    # padded query rows: fully unmasked
                vl = jnp.pad(vl, ((0, 0), (0, Qp - Q)), constant_values=K)
            vl = vl.reshape(B, Qp, 1)
            vl_spec = pl.BlockSpec((None, tq, 1), lambda b, qi, ki, *_: (b, qi, 0))
            out = pl.pallas_call(
                functools.partial(_attn_kernel_vl_rows, scale=scale,
                                  tk=tk, k_actual=K, k_padded=Kp),
                out_shape=out_shape,
                grid_spec=pltpu.PrefetchScalarGridSpec(
                    num_scalar_prefetch=0, grid=grid,
                    in_specs=[q_spec, k_spec, v_spec, vl_spec],
                    out_specs=o_spec,
                    scratch_shapes=scratch),
                compiler_params=cparams,
            )(queries, keys, values, vl)

    if Qp != Q:
        out = out[:, :Q, :]
    return out


def _reference(queries, keys, values, valid_lens=None):
    """Pure-JAX reference mirroring the PyTorch module."""
    d = queries.shape[-1]
    scores = jnp.einsum("bqd,bkd->bqk", queries, keys) / math.sqrt(d)
    if valid_lens is None:
        weights = jax.nn.softmax(scores, axis=-1)
    else:
        B, Q, K = scores.shape
        vl = jnp.asarray(valid_lens)
        if vl.ndim == 1:
            vl = jnp.broadcast_to(vl[:, None], (B, Q))
        mask = (jnp.arange(K, dtype=jnp.float32)[None, None, :]
                < vl[:, :, None].astype(jnp.float32))
        scores = jnp.where(mask, scores, _MASK_VAL)
        weights = jax.nn.softmax(scores, axis=-1)
    return jnp.einsum("bqk,bkv->bqv", weights, values)


if __name__ == "__main__":
    key = jax.random.PRNGKey(0)
    kq, kk, kv = jax.random.split(key, 3)

    # Main check: f32, 1-D valid_lens (scalar-prefetch masked path).
    B, Q, K, D, V = 2, 8, 16, 32, 32
    queries = jax.random.normal(kq, (B, Q, D), dtype=jnp.float32)
    keys = jax.random.normal(kk, (B, K, D), dtype=jnp.float32)
    values = jax.random.normal(kv, (B, K, V), dtype=jnp.float32)
    valid_lens = jnp.array([5, 12], dtype=jnp.int32)     # shape (B,)

    out = jax.block_until_ready(dot_product_attention(queries, keys, values, valid_lens))
    ref = _reference(queries, keys, values, valid_lens)
    np.testing.assert_allclose(np.asarray(out), np.asarray(ref), rtol=2e-3, atol=2e-3)

    # valid_lens=None path (no mask work at all).
    out_none = jax.block_until_ready(dot_product_attention(queries, keys, values, None))
    ref_none = _reference(queries, keys, values, None)
    np.testing.assert_allclose(np.asarray(out_none), np.asarray(ref_none),
                               rtol=2e-3, atol=2e-3)

    # bf16 inputs: matmuls on bf16 operands, softmax stays f32, tq rounds to 16.
    qb, kb, vb = (x.astype(jnp.bfloat16) for x in (queries, keys, values))
    out_bf16 = jax.block_until_ready(dot_product_attention(qb, kb, vb, valid_lens))
    np.testing.assert_allclose(np.asarray(out_bf16.astype(jnp.float32)),
                               np.asarray(ref), rtol=1e-1, atol=1e-1)

    # Non-aligned Q (padding path) + 2-D valid_lens (per-row masked path).
    Q2 = 5
    q2 = jax.random.normal(kq, (B, Q2, D), dtype=jnp.float32)
    vl2 = jnp.array([[3, 5, 1, 16, 7], [2, 9, 16, 4, 6]], dtype=jnp.int32)  # (B, Q2)
    out2 = jax.block_until_ready(dot_product_attention(q2, keys, values, vl2))
    ref2 = _reference(q2, keys, values, vl2)
    np.testing.assert_allclose(np.asarray(out2), np.asarray(ref2), rtol=2e-3, atol=2e-3)

    # Multi K-tile online softmax + padded K (K=20, tk=8 -> 3 tiles, 4 pad cols).
    K3 = 20
    k3 = jax.random.normal(kk, (B, K3, D), dtype=jnp.float32)
    v3 = jax.random.normal(kv, (B, K3, V), dtype=jnp.float32)
    vl3 = jnp.array([7, 20], dtype=jnp.int32)
    out3 = jax.block_until_ready(
        dot_product_attention(queries, k3, v3, vl3, tq_max=8, tk_max=8))
    ref3 = _reference(queries, k3, v3, vl3)
    np.testing.assert_allclose(np.asarray(out3), np.asarray(ref3), rtol=2e-3, atol=2e-3)

    out3n = jax.block_until_ready(
        dot_product_attention(queries, k3, v3, None, tq_max=8, tk_max=8))
    ref3n = _reference(queries, k3, v3, None)
    np.testing.assert_allclose(np.asarray(out3n), np.asarray(ref3n), rtol=2e-3, atol=2e-3)

    print("KERNEL_OK")
</pallas_src>

<mosaic_0001>
module attributes {stable_mosaic.version = 11 : i64} {
  func.func @_attn_kernel_vl_scalar(%arg0: i32, %arg1: i32, %arg2: i32, %arg3: memref<2xi32, #tpu.memory_space<smem>>, %arg4: memref<1x8x32xf32, #tpu.memory_space<vmem>>, %arg5: memref<1x16x32xf32, #tpu.memory_space<vmem>>, %arg6: memref<1x16x32xf32, #tpu.memory_space<vmem>>, %arg7: memref<1x8x32xf32, #tpu.memory_space<vmem>>, %arg8: memref<8x1xf32, #tpu.memory_space<vmem>>, %arg9: memref<8x1xf32, #tpu.memory_space<vmem>>, %arg10: memref<8x32xf32, #tpu.memory_space<vmem>>) attributes {dimension_semantics = [#tpu.dimension_semantics<parallel>, #tpu.dimension_semantics<parallel>, #tpu.dimension_semantics<arbitrary>], iteration_bounds = array<i64: 2, 1, 1>, scalar_prefetch = 1 : i64, scratch_operands = 3 : i64, tpu.core_type = #tpu.core_type<tc>, window_params = [{transform_indices = @transform_0, window_bounds = array<i64: 1, 8, 32>}, {transform_indices = @transform_1, window_bounds = array<i64: 1, 16, 32>}, {transform_indices = @transform_2, window_bounds = array<i64: 1, 16, 32>}, {transform_indices = @transform_3, window_bounds = array<i64: 1, 8, 32>}]} {
    %0 = arith.index_cast %arg0 : i32 to index
    %1 = memref.load %arg3[%0] : memref<2xi32, #tpu.memory_space<smem>>
    %c0 = arith.constant 0 : index
    %c0_0 = arith.constant 0 : index
    %c0_1 = arith.constant 0 : index
    %2 = vector.load %arg4[%c0, %c0_0, %c0_1] : memref<1x8x32xf32, #tpu.memory_space<vmem>>, vector<1x8x32xf32>
    %3 = vector.shape_cast %2 : vector<1x8x32xf32> to vector<8x32xf32>
    %cst = arith.constant 0.176776692 : f32
    %4 = vector.broadcast %cst : f32 to vector<8x32xf32>
    %5 = arith.mulf %3, %4 : vector<8x32xf32>
    %c0_2 = arith.constant 0 : index
    %c0_3 = arith.constant 0 : index
    %c0_4 = arith.constant 0 : index
    %6 = vector.load %arg5[%c0_2, %c0_3, %c0_4] : memref<1x16x32xf32, #tpu.memory_space<vmem>>, vector<1x16x32xf32>
    %7 = vector.shape_cast %6 : vector<1x16x32xf32> to vector<16x32xf32>
    %cst_5 = arith.constant dense<0.000000e+00> : vector<8x16xf32>
    %8 = tpu.matmul %5, %7, %cst_5 {dimension_numbers = #tpu.dot_dimension_numbers<[1], [1], [0], [0], [0, 0, 1, 0], [], []>} : vector<8x32xf32>, vector<16x32xf32>, vector<8x16xf32> -> vector<8x16xf32>
    %c16_i32 = arith.constant 16 : i32
    %9 = arith.muli %arg2, %c16_i32 : i32
    %10 = tpu.iota {dimensions = array<i32: 1>} : vector<8x16xi32>
    %11 = vector.broadcast %9 : i32 to vector<8x16xi32>
    %12 = arith.addi %11, %10 : vector<8x16xi32>
    %13 = vector.broadcast %1 : i32 to vector<8x16xi32>
    %14 = arith.cmpi slt, %12, %13 : vector<8x16xi32>
    %cst_6 = arith.constant -1.000000e+06 : f32
    %15 = vector.broadcast %cst_6 : f32 to vector<8x16xf32>
    %16 = arith.select %14, %8, %15 : vector<8x16xi1>, vector<8x16xf32>
    %c0_i32 = arith.constant 0 : i32
    %17 = arith.cmpi eq, %arg2, %c0_i32 : i32
    %18 = arith.extui %17 : i1 to i32
    %c0_i32_7 = arith.constant 0 : i32
    %19 = arith.cmpi ne, %18, %c0_i32_7 : i32
    scf.if %19 {
      %cst_28 = arith.constant 0xFF800000 : f32
      %47 = vector.broadcast %cst_28 : f32 to vector<8x1xf32>
      %c0_29 = arith.constant 0 : index
      %c0_30 = arith.constant 0 : index
      %48 = vector.load %arg8[%c0_29, %c0_30] : memref<8x1xf32, #tpu.memory_space<vmem>>, vector<8x1xf32>
      tpu.vector_store %arg8[%c0_29, %c0_30], %47 {strides = array<i32>} : memref<8x1xf32, #tpu.memory_space<vmem>>, vector<8x1xf32>,
      %cst_31 = arith.constant 0.000000e+00 : f32
      %49 = vector.broadcast %cst_31 : f32 to vector<8x1xf32>
      %c0_32 = arith.constant 0 : index
      %c0_33 = arith.constant 0 : index
      %50 = vector.load %arg9[%c0_32, %c0_33] : memref<8x1xf32, #tpu.memory_space<vmem>>, vector<8x1xf32>
      tpu.vector_store %arg9[%c0_32, %c0_33], %49 {strides = array<i32>} : memref<8x1xf32, #tpu.memory_space<vmem>>, vector<8x1xf32>,
      %cst_34 = arith.constant 0.000000e+00 : f32
      %51 = vector.broadcast %cst_34 : f32 to vector<8x32xf32>
      %c0_35 = arith.constant 0 : index
      %c0_36 = arith.constant 0 : index
      %52 = vector.load %arg10[%c0_35, %c0_36] : memref<8x32xf32, #tpu.memory_space<vmem>>, vector<8x32xf32>
      tpu.vector_store %arg10[%c0_35, %c0_36], %51 {strides = array<i32>} : memref<8x32xf32, #tpu.memory_space<vmem>>, vector<8x32xf32>,
    } else {
    }
    %c0_8 = arith.constant 0 : index
    %c0_9 = arith.constant 0 : index
    %20 = vector.load %arg8[%c0_8, %c0_9] : memref<8x1xf32, #tpu.memory_space<vmem>>, vector<8x1xf32>
    %cst_10 = arith.constant dense<0xFF800000> : vector<8xf32>
    %21 = vector.multi_reduction <maximumf>, %16, %cst_10 [1] : vector<8x16xf32> to vector<8xf32>
    %22 = vector.shape_cast %21 : vector<8xf32> to vector<8x1xf32>
    %23 = arith.maximumf %20, %22 : vector<8x1xf32>
    %24 = arith.subf %20, %23 : vector<8x1xf32>
    %25 = math.exp %24 : vector<8x1xf32>
    %26 = vector.broadcast %23 : vector<8x1xf32> to vector<8x16xf32>
    %27 = arith.subf %16, %26 : vector<8x16xf32>
    %28 = math.exp %27 : vector<8x16xf32>
    %c0_11 = arith.constant 0 : index
    %c0_12 = arith.constant 0 : index
    %29 = vector.load %arg9[%c0_11, %c0_12] : memref<8x1xf32, #tpu.memory_space<vmem>>, vector<8x1xf32>
    %30 = arith.mulf %25, %29 : vector<8x1xf32>
    %cst_13 = arith.constant dense<0.000000e+00> : vector<8xf32>
    %31 = vector.multi_reduction <add>, %28, %cst_13 [1] : vector<8x16xf32> to vector<8xf32>
    %32 = vector.shape_cast %31 : vector<8xf32> to vector<8x1xf32>
    %33 = arith.addf %30, %32 : vector<8x1xf32>
    %c0_14 = arith.constant 0 : index
    %c0_15 = arith.constant 0 : index
    %34 = vector.load %arg9[%c0_14, %c0_15] : memref<8x1xf32, #tpu.memory_space<vmem>>, vector<8x1xf32>
    tpu.vector_store %arg9[%c0_14, %c0_15], %33 {strides = array<i32>} : memref<8x1xf32, #tpu.memory_space<vmem>>, vector<8x1xf32>,
    %c0_16 = arith.constant 0 : index
    %c0_17 = arith.constant 0 : index
    %35 = vector.load %arg10[%c0_16, %c0_17] : memref<8x32xf32, #tpu.memory_space<vmem>>, vector<8x32xf32>
    %36 = vector.broadcast %25 : vector<8x1xf32> to vector<8x32xf32>
    %37 = arith.mulf %36, %35 : vector<8x32xf32>
    %c0_18 = arith.constant 0 : index
    %c0_19 = arith.constant 0 : index
    %c0_20 = arith.constant 0 : index
    %38 = vector.load %arg6[%c0_18, %c0_19, %c0_20] : memref<1x16x32xf32, #tpu.memory_space<vmem>>, vector<1x16x32xf32>
    %39 = vector.shape_cast %38 : vector<1x16x32xf32> to vector<16x32xf32>
    %cst_21 = arith.constant dense<0.000000e+00> : vector<8x32xf32>
    %40 = tpu.matmul %28, %39, %cst_21 {dimension_numbers = #tpu.dot_dimension_numbers<[1], [0], [0], [1], [0, 0, 1, 1], [], []>} : vector<8x16xf32>, vector<16x32xf32>, vector<8x32xf32> -> vector<8x32xf32>
    %41 = arith.addf %37, %40 : vector<8x32xf32>
    %c0_22 = arith.constant 0 : index
    %c0_23 = arith.constant 0 : index
    %42 = vector.load %arg10[%c0_22, %c0_23] : memref<8x32xf32, #tpu.memory_space<vmem>>, vector<8x32xf32>
    tpu.vector_store %arg10[%c0_22, %c0_23], %41 {strides = array<i32>} : memref<8x32xf32, #tpu.memory_space<vmem>>, vector<8x32xf32>,
    %c0_24 = arith.constant 0 : index
    %c0_25 = arith.constant 0 : index
    %43 = vector.load %arg8[%c0_24, %c0_25] : memref<8x1xf32, #tpu.memory_space<vmem>>, vector<8x1xf32>
    tpu.vector_store %arg8[%c0_24, %c0_25], %23 {strides = array<i32>} : memref<8x1xf32, #tpu.memory_space<vmem>>, vector<8x1xf32>,
    %c0_i32_26 = arith.constant 0 : i32
    %44 = arith.cmpi eq, %arg2, %c0_i32_26 : i32
    %45 = arith.extui %44 : i1 to i32
    %c0_i32_27 = arith.constant 0 : i32
    %46 = arith.cmpi ne, %45, %c0_i32_27 : i32
    scf.if %46 {
      %c0_28 = arith.constant 0 : index
      %c0_29 = arith.constant 0 : index
      %47 = vector.load %arg10[%c0_28, %c0_29] : memref<8x32xf32, #tpu.memory_space<vmem>>, vector<8x32xf32>
      %c0_30 = arith.constant 0 : index
      %c0_31 = arith.constant 0 : index
      %48 = vector.load %arg9[%c0_30, %c0_31] : memref<8x1xf32, #tpu.memory_space<vmem>>, vector<8x1xf32>
      %49 = tpu.reciprocal %48 : vector<8x1xf32> -> vector<8x1xf32>
      %50 = vector.broadcast %49 : vector<8x1xf32> to vector<8x32xf32>
      %51 = arith.mulf %47, %50 : vector<8x32xf32>
      %c0_32 = arith.constant 0 : index
      %c0_33 = arith.constant 0 : index
      %c0_34 = arith.constant 0 : index
      %52 = vector.load %arg7[%c0_32, %c0_33, %c0_34] : memref<1x8x32xf32, #tpu.memory_space<vmem>>, vector<1x8x32xf32>
      %53 = vector.shape_cast %52 : vector<1x8x32xf32> to vector<8x32xf32>
      %54 = vector.shape_cast %51 : vector<8x32xf32> to vector<1x8x32xf32>
      tpu.vector_store %arg7[%c0_32, %c0_33, %c0_34], %54 {strides = array<i32>} : memref<1x8x32xf32, #tpu.memory_space<vmem>>, vector<1x8x32xf32>,
    } else {
    }
    return
  }
  func.func @transform_0(%arg0: i32, %arg1: i32, %arg2: i32, %arg3: memref<2xi32, #tpu.memory_space<smem>>) -> (i32, i32, i32) {
    %c0_i32 = arith.constant 0 : i32
    %c0_i32_0 = arith.constant 0 : i32
    return %arg0, %arg1, %c0_i32 : i32, i32, i32
  }
  func.func @transform_1(%arg0: i32, %arg1: i32, %arg2: i32, %arg3: memref<2xi32, #tpu.memory_space<smem>>) -> (i32, i32, i32) {
    %c0_i32 = arith.constant 0 : i32
    %c0_i32_0 = arith.constant 0 : i32
    return %arg0, %arg2, %c0_i32 : i32, i32, i32
  }
  func.func @transform_2(%arg0: i32, %arg1: i32, %arg2: i32, %arg3: memref<2xi32, #tpu.memory_space<smem>>) -> (i32, i32, i32) {
    %c0_i32 = arith.constant 0 : i32
    %c0_i32_0 = arith.constant 0 : i32
    return %arg0, %arg2, %c0_i32 : i32, i32, i32
  }
  func.func @transform_3(%arg0: i32, %arg1: i32, %arg2: i32, %arg3: memref<2xi32, #tpu.memory_space<smem>>) -> (i32, i32, i32) {
    %c0_i32 = arith.constant 0 : i32
    %c0_i32_0 = arith.constant 0 : i32
    return %arg0, %arg1, %c0_i32 : i32, i32, i32
  }
}

</mosaic_0001>

<bundles_post_ra>
// kernel: tpu_custom_call.1
= control target key start
LH: loop header
LB: loop body
LE: loop exit
PB: predicated region body
PF: predicated region fallthrough
CT: control target
= control target key end

     0   :  { %s987_s15 = smov [#allocation6]   ;;  %s1243_s0 = inlined_call_operand.hbm [shape: s32[2], index: 0, kind: input, shape index: {}]   ;;  %s1244_s1 = inlined_call_operand.hbm [shape: f32[2,8,32], index: 1, kind: input, shape index: {}]   ;;  %s1245_s2 = inlined_call_operand.hbm [shape: f32[2,16,32], index: 2, kind: input, shape index: {}]   ;;  %s1246_s3 = inlined_call_operand.hbm [shape: f32[2,16,32], index: 3, kind: input, shape index: {}]   ;;  %s1247_s4 = inlined_call_operand.hbm [shape: f32[2,8,32], index: 4, kind: output, shape index: {}]  }
   0x1   :  { %1251 = sst [smem:[#allocation21_spill]] %s1245_s2 }
   0x2   :  { %10 = dma.hbm_to_smem %s1243_s0, 16, %s987_s15, [#allocation5] }
   0x3   :  { %949 = dma.done.wait [#allocation5], 16 }
   0x4   :  { %950 = vsyncadd [#allocation5], 4294967280 }
   0x5   :  { %12 = sfence }
   0x6   :  { %13 = vsyncpa [#allocation8], 0 }
   0x7   :  { %15 = vsyncpa [#allocation8 + $0x1], 0 }
   0x8   :  { %16 = vsyncpa [#allocation11], 0 }
   0x9   :  { %18 = vsyncpa [#allocation11 + $0x1], 0 }
   0xa   :  { %19 = vsyncpa [#allocation9], 0 }
   0xb   :  { %21 = vsyncpa [#allocation9 + $0x1], 0  ;;  %s1026_s18 = smov 0   ;;  %s1028_s19 = smov 0  }
   0xc   :  { %s1030_s20 = smov 0   ;;  %s1032_s21 = smov 0  }
   0xd   :  { %s1034_s22 = smov 0   ;;  %s1036_s0 = smov 0  }
   0xe LB: > { %1252 = sst [smem:[#allocation18_spill]] %s973_s20  ;;  %s1057_s23 = sadd.s32 4294967295, %s985_s0   ;;  %s985_s0 = sphi %s1036_s0, %s27_s0   ;;  %s981_s22 = sphi %s1034_s22, %s1270_s22   ;;  %s977_s21 = sphi %s1032_s21, %s1269_s21   ;;  %s973_s20 = sphi %s1030_s20, %s1265_s20   ;;  %s969_s19 = sphi %s1028_s19, %s1268_s19   ;;  %s965_s18 = sphi %s1026_s18, %s1267_s18  }
   0xf   : > { %s674_s24 = sadd.s32 4294967294, %s985_s0   ;;  %s46_s25 = sadd.s32 1, %s981_s22 }
  0x10   : > { %s55_s26 = sadd.s32 1, %s973_s20  ;;  %p48_p0 = scmp.ge.s32.totalorder %s46_s25, 2 }
  0x11   : > { %p62_p1 = scmp.ne.s32.totalorder %s973_s20, %s969_s19  ;;  %p63_p2 = scmp.eq.s32.totalorder %s985_s0, 0 }
  0x12   : > { %p68_p3 = scmp.ne.s32.totalorder %s969_s19, %s965_s18  ;;  %s1272_s25 = smov (%p48_p0, %s46_s25), 0 }
  0x13   : > { %1253 = sst [smem:[#allocation19_spill]] %s1272_s25  ;;  %p1069_p4 = por %p63_p2, %p62_p1 }
  0x14   : > { %p69_p5 = scmp.eq.s32.totalorder %s1057_s23, 0  ;;  %s50_s28 = ssub.s32 %s981_s22, %s1272_s25 }
  0x15   : > { %p150_p6 = scmp.eq.s32.totalorder %s1057_s23, 1  ;;  %p53_p7 = scmp.eq.s32.totalorder %s50_s28, 0 }
  0x16   : > { %p1077_p8 = por %p69_p5, %p68_p3  ;;  %p156_p10 = scmp.eq.s32.totalorder %s674_s24, 1 }
  0x17   : > { %p1081_p9 = por %p150_p6, %p62_p1  ;;  %p742_p13 = scmp.lt.s32.totalorder %s985_s0, 2 }
  0x18   : > { %s1086_s5 = scalar_select %p53_p7, %s973_s20, %s55_s26  }
  0x19   : > { %p1088_p11 = por %p156_p10, %p68_p3  ;;  %s1095_s7 = sand.u32 1, %s973_s20  }
  0x1a   : > { %1257 = sst [smem:[#allocation20_spill]] %s1086_s5  ;;  %s195_s8 = sand.u32 1, %s985_s0  }
  0x1b   : > { %s679_s9 = sshll.u32 %s1095_s7, 4  ;;  %p1101_p0 = pnand %p742_p13, %p1069_p4 }
  0x1c   : > { %s698_s11 = sshll.u32 %s981_s22, 8  ;;  %s1260_s2 = sld [smem:[#allocation21_spill]] }
  0x1d   : > { %s199_s15 = scalar_lea.vmem [#allocation10], %s679_s9  ;;  %s1111_s17 = scalar_lea.sflag [#allocation11], %s195_s8 }
  0x1e   : > { %s208_s16 = sshll.u32 %s199_s15, 4  ;;  %p817_p1 = pneg %p1101_p0  ;;  %s209_s16 = int_to_ptr.vmem [resolvable:$true] %s208_s16 }
  0x1f   : > { %s828_s24 = scalar_lea.vmem %s209_s16, 256  ;;  %s988_s26 = smov [#allocation10]  }
  0x20   : > { %p829_p2 = scmp.ne.s32.totalorder %s209_s16, %s828_s24  ;;  %s833_s27 = sshll.u32 %s988_s26, 4  ;;  %s834_s27 = int_to_ptr.vmem [resolvable:$false] %s833_s27 }
  0x21   : > { %s835_s28 = scalar_lea.vmem %s834_s27, 512  ;;  %p836_p5 = scmp.lt.s32.totalorder %s209_s16, %s834_s27 }
  0x22   : > { %s207_s14 = scalar_lea.hbm %s1260_s2, %s698_s11  ;;  %p831_p3 = pnand %p829_p2, %p817_p1 }
  0x23   : > { %p837_p6 = scmp.lt.s32.totalorder %s835_s28, %s828_s24 }
  0x24   : > { %p832_p4 = pneg %p831_p3 }
  0x25   : > { %p838_p7 = por %p837_p6, %p836_p5 }
  0x27   : > { %p839_p10 = pnand %p838_p7, %p832_p4 }
  0x29   : > { %842 = shalt.err (!%p839_p10)
}
  0x2a   : > { %s1250_s12 = smov 128   ;;  %s990_s8 = smov 8  }
  0x2b   : > { %734 = dma.hbm_to_vmem [thread:$0]  (!%p1101_p0), %s207_s14, 256, %s209_s16, %s1111_s17, %s1250_s12, %s1250_s12, %s990_s8  }
  0x2c   : > { %s1127_s24 = scalar_lea.hbm %s1246_s3, %s698_s11  ;;  %p685_p13 = scmp.ge.s32.totalorder %s985_s0, 1 }
  0x2d   : > { %s222_s26 = scalar_lea.vmem [#allocation12], %s679_s9  ;;  %p239_p2 = scmp.lt.s32.totalorder %s985_s0, 3 }
  0x2e   : > { %s231_s27 = sshll.u32 %s222_s26, 4  ;;  %s677_s2 = sshll.u32 %s1095_s7, 3  ;;  %s1142_s27 = int_to_ptr.vmem [resolvable:$true] %s231_s27 }
  0x2f   : > { %p1133_p3 = pnand %p685_p13, %p239_p2  ;;  %s678_s25 = sshll.u32 %s981_s22, 7 }
  0x30   : > { %s186_s14 = scalar_lea.hbm %s1244_s1, %s678_s25  ;;  %s180_s11 = scalar_lea.vmem [#allocation7], %s677_s2 }
  0x31   : > { %s188_s16 = sshll.u32 %s180_s11, 4  ;;  %s177_s13 = scalar_lea.sflag [#allocation8], %s1095_s7  ;;  %s189_s16 = int_to_ptr.vmem [resolvable:$true] %s188_s16 }
  0x32   : > { %s856_s15 = scalar_lea.vmem %s189_s16, 128  ;;  %s991_s9 = smov [#allocation7]  }
  0x33   : > { %p857_p4 = scmp.ne.s32.totalorder %s189_s16, %s856_s15  ;;  %s861_s26 = sshll.u32 %s991_s9, 4  ;;  %s862_s26 = int_to_ptr.vmem [resolvable:$false] %s861_s26 }
  0x34   : > { %s863_s12 = scalar_lea.vmem %s862_s26, 256  ;;  %p864_p7 = scmp.lt.s32.totalorder %s189_s16, %s862_s26 }
  0x35   : > { %p859_p5 = pnand %p857_p4, %p817_p1  ;;  %p865_p10 = scmp.lt.s32.totalorder %s863_s12, %s856_s15 }
  0x37   : > { %p860_p6 = pneg %p859_p5  ;;  %p866_p13 = por %p865_p10, %p864_p7 }
  0x39   : > { %p867_p2 = pnand %p866_p13, %p860_p6 }
  0x3b   : > { %870 = shalt.err (!%p867_p2)
}
  0x3c   : > { %731 = dma.hbm_to_vmem [thread:$0]  (!%p1101_p0), %s186_s14, 128, %s189_s16, %s177_s13  }
  0x3d   : > { %s884_s2 = scalar_lea.vmem %s1142_s27, 256  ;;  %s992_s20 = smov [#allocation12]  }
  0x3e   : > { %p885_p12 = scmp.ne.s32.totalorder %s1142_s27, %s884_s2  ;;  %s889_s25 = sshll.u32 %s992_s20, 4  ;;  %s890_s25 = int_to_ptr.vmem [resolvable:$false] %s889_s25 }
  0x3f   : > { %s891_s5 = scalar_lea.vmem %s890_s25, 512  ;;  %p892_p7 = scmp.lt.s32.totalorder %s1142_s27, %s890_s25 }
  0x40   : > { %p887_p4 = pnand %p885_p12, %p817_p1  ;;  %p893_p6 = scmp.lt.s32.totalorder %s891_s5, %s884_s2 }
  0x42   : > { %p888_p5 = pneg %p887_p4  ;;  %p894_p10 = por %p893_p6, %p892_p7 }
  0x44   : > { %p895_p13 = pnand %p894_p10, %p888_p5 }
  0x46   : > { %898 = shalt.err (!%p895_p13)
}
  0x47   : > { %s1262_s7 = smov 128   ;;  %243 = sbr.rel (%p1133_p3) target bundleno = 869 (0x365), region = 32 }
  0x48   : > { %737 = dma.hbm_to_vmem [thread:$0]  (!%p1101_p0), %s1127_s24, 256, %s1142_s27, %s1111_s17, %s1262_s7, %s1262_s7, %s990_s8  }
  0x49   : > { %s1167_s12 = sand.u32 (!%p1133_p3), 1, %s969_s19  }
  0x4a   : > { %s686_s14 = sshll.u32 (!%p1133_p3), %s1167_s12, 3  ;;  %s246_s11 = scalar_lea.sflag (!%p1133_p3), [#allocation8], %s1167_s12 }
  0x4b   : > { %s249_s10 = scalar_lea.vmem (!%p1133_p3), [#allocation7], %s686_s14 }
  0x4c   : > { %952 = dma.done.wait (%p1077_p8), %s246_s11, 128  }
  0x4d   : > { %954 = vsyncadd (%p1077_p8), %s246_s11, 4294967168  ;;  %s254_s17 = sand.u32 1, %s1057_s23   ;;  %s687_s8 = sshll.u32 %s1167_s12, 4 }
  0x4e   : > { %s255_s24 = scalar_lea.sflag [#allocation11], %s254_s17  ;;  %s258_s27 = scalar_lea.vmem [#allocation10], %s687_s8 }
  0x4f   : > { %956 = dma.done.wait (%p1077_p8), %s255_s24, 512  }
  0x50   : > { %958 = vsyncadd (%p1077_p8), %s255_s24, 4294966784  ;;  %vm307_vm0 = vcmask 261120   ;;  %v993_v0 = vmov 0.0   ;;  %vm994_vm1 = vmmov 0   ;;  %v306_v1 = vld [vmem:[%s258_s27 + $0x8] sm:$0xff]  ;;  %v305_v3 = vld [vmem:[%s258_s27] sm:$0xff]  ;;  %v388_v6 = vlaneseq }
  0x51   : > { %706 = vmatprep.subr.mxu0 %v993_v0  ;;  %402 = vst.msk [vmem:[#allocation4] sm:$0xff] %vm307_vm0, %v993_v0  ;;  %710 = vmatprep.mubr.msk.f32.mxu0 %vm994_vm1, %v993_v0  ;;  %v303_v2 = vld [vmem:[%s249_s10] sm:$0xff]  ;;  %vm399_vm2 = vcmask 7168   ;;  %v995_v5 = vmov -inf   ;;  %s302_s23 = sld [smem:[#allocation6 + %s977_s21]]  ;;  %vm404_vm4 = vcmask 130048  }
  0x52   : > { %713 = vmatprep.subr.mxu1 %v993_v0  ;;  %717 = vmatprep.mubr.msk.f32.mxu1 %vm994_vm1, %v993_v0  ;;  %v304_v4 = vmul.f32 0.17677669, %v303_v2  ;;  %400 = vst.msk [vmem:[#allocation2] sm:$0xff] %vm399_vm2, %v995_v5  ;;  %401 = vst.msk [vmem:[#allocation3] sm:$0xff] %vm399_vm2, %v993_v0  ;;  %v389_v7 = vand.u32 127, %v388_v6  ;;  %v996_v13 = vmov 0  }
  0x53   : > { %707 = vmatpush3.xpose.msk.msra.mxu0 %vm307_vm0, %v306_v1  ;;  %799 = vset.pattern.permute.xlu0 %v996_v13  ;;  %s267_s29 = scalar_lea.vmem [#allocation12], %s687_s8  ;;  %s695_s28 = sshll.u32 %s977_s21, 7 }
  0x54   : > { %708 = vmatprep.subr.mxu0 %v993_v0  ;;  %800 = vset.pattern.permute.xlu1 %v996_v13  ;;  %v436_v18 = vld [vmem:[%s267_s29 + $0x8] sm:$0xff]  ;;  %v435_v19 = vld [vmem:[%s267_s29] sm:$0xff]  ;;  %s299_s16 = scalar_lea.vmem [#allocation13], %s686_s14  ;;  %s539_s26 = scalar_lea.hbm %s1247_s4, %s695_s28 }
  0x55   : > { %714 = vmatpush3.msra.mxu1 %v436_v18  ;;  %s541_s13 = sshll.u32 %s299_s16, 4  ;;  %s527_s2 = scalar_lea.sflag [#allocation9], %s1167_s12  ;;  %s542_s13 = int_to_ptr.vmem [resolvable:$true] %s541_s13 }
  0x56   : > { %715 = vmatprep.subr.mxu1 %v993_v0  ;;  %s899_s20 = scalar_lea.vmem %s542_s13, 128  ;;  %s997_s21 = smov [#allocation13]  }
  0x57   : > { %709 = vmatpush3.xpose.msk.msra.mxu0 %vm307_vm0, %v305_v3  ;;  %v392_v8 = vstv %s302_s23  ;;  %716 = vmatpush3.msra.mxu1 %v435_v19  ;;  %p900_p8 = scmp.ne.s32.totalorder %s542_s13, %s899_s20  ;;  %s903_s25 = sshll.u32 %s997_s21, 4  ;;  %s904_s25 = int_to_ptr.vmem [resolvable:$false] %s903_s25 }
  0x58   : > { %vm393_vm3 = vcmp.lt.s32.totalorder %v389_v7, %v392_v8  ;;  %v428_v33 = vld [vmem:[#allocation4] sm:$0xff]  ;;  %s905_s5 = scalar_lea.vmem %s904_s25, 256  ;;  %p906_p1 = scmp.lt.s32.totalorder %s542_s13, %s904_s25 }
  0x59   : > { %v403_v14 = vld [vmem:[#allocation2] sm:$0xff]  ;;  %v420_v27 = vld [vmem:[#allocation3] sm:$0xff]  ;;  %p901_p12 = pnand %p900_p8, %p1081_p9  ;;  %p907_p3 = scmp.lt.s32.totalorder %s905_s5, %s899_s20 }
  0x5a   : > { %711 = vmatmul.mubr.msk.f32.vlgmr.msra.gmra.mxu0 %vm307_vm0, %v304_v4 }
  0x5b   : > { %p902_p0 = pneg %p901_p12  ;;  %p908_p2 = por %p907_p3, %p906_p1 }
  0x5d   : > { %p909_p4 = pnand %p908_p2, %p902_p0 }
 0x11a   : > { %v383_v9 = vpop.f32.mrf.mxu0 }
 0x11b   : > { %v394_v10 = vsel %vm393_vm3, %v383_v9, -1000000.0 }
 0x11c   : > { %v712_v11 = vpop.f32.mrf.mxu0  ;;  %v405_v12 = vsel %vm404_vm4, %v394_v10, -inf }
 0x11d   : > { %406 = vmax.xlane.f32.xlu0 %v405_v12 }
 0x1a6   : > { %v407_v15 = vpop.xlane.xlu0 %406 }
 0x1a7   : > { %v408_v16 = vmax.f32 %v403_v14, %v407_v15 }
 0x1a9   : > { %v409_v17 = vsub.f32 %v403_v14, %v408_v16  ;;  %512 = vst.msk [vmem:[#allocation2] sm:$0xff] %vm399_vm2, %v408_v16  ;;  %414 = vperm.xlu0 %799, %v408_v16  }
 0x1ab   : > { %v410_v24 = vmul.f32 1.442695, %v409_v17 }
 0x224   : > { %v415_v20 = vpop.permute.xlu0 %414 }
 0x225   : > { %v417_v21 = vsub.f32 %v394_v10, %v415_v20 }
 0x227   : > { %v418_v22 = vmul.f32 1.442695, %v417_v21 }
 0x229   : > { %801 = vpow2.f32 %v418_v22 }
 0x22a   : > { %803 = vpow2.f32 %v410_v24 }
 0x236   : > { %v802_v23 = vpop.eup %801 }
 0x237   : > { %718 = vmatmul.mubr.msk.f32.vlgmr.msra.gmra.mxu1 %vm404_vm4, %v802_v23  ;;  %v422_v25 = vsel %vm404_vm4, %v802_v23, 0.0  ;;  %v804_v26 = vpop.eup %803 }
 0x238   : > { %423 = vadd.xlane.f32.xlu1 %v422_v25  ;;  %v421_v28 = vmul.f32 %v804_v26, %v420_v27 }
 0x249   : > { %431 = vperm.xlu1 %800, %v804_v26  }
 0x2c1   : > { %v424_v29 = vpop.xlane.xlu1 %423 }
 0x2c2   : > { %v425_v30 = vadd.f32 %v424_v29, %v421_v28 }
 0x2c4   : > { %427 = vst.msk [vmem:[#allocation3] sm:$0xff] %vm399_vm2, %v425_v30 }
 0x2c5   : > { %v432_v34 = vpop.permute.xlu1 %431 }
 0x2c6   : > { %v434_v35 = vmul.f32 %v432_v34, %v428_v33 }
 0x2cb   : > { %v517_v31 = vld [vmem:[#allocation3] sm:$0xff] }
 0x2cc   : > { %805 = vrcp.f32 %v517_v31 }
 0x2d9   : > { %v806_v32 = vpop.eup %805 }
 0x2da   : > { %521 = vperm.xlu1 %800, %v806_v32  }
 0x2f7   : > { %v506_v36 = vpop.f32.mrf.mxu1 }
 0x2f8   : > { %v510_v37 = vadd.f32 %v506_v36, %v434_v35 }
 0x2f9   : > { %v719_v38 = vpop.f32.mrf.mxu1 }
 0x2fa   : > { %511 = vst.msk [vmem:[#allocation4] sm:$0xff] %vm307_vm0, %v510_v37 }
 0x301   : > { %v516_v39 = vld [vmem:[#allocation4] sm:$0xff] }
 0x355   : > { %v522_v40 = vpop.permute.xlu1 %521 }
 0x356   : > { %v524_v41 = vmul.f32 %v522_v40, %v516_v39 }
 0x358   : > { %525 = vst.msk [vmem:[%s299_s16] sm:$0xff] %vm307_vm0, %v524_v41 }
 0x359   : > { %912 = shalt.err (!%p909_p4)
}
 0x35a   : > { %s913_s7 = scalar_lea.hbm %s539_s26, 128  ;;  %s917_s11 = scalar_lea.hbm %s1247_s4, 256 }
 0x35b   : > { %p914_p5 = scmp.ne.s32.totalorder %s539_s26, %s913_s7  ;;  %p918_p10 = scmp.lt.s32.totalorder %s539_s26, %s1247_s4 }
 0x35c   : > { %p919_p13 = scmp.lt.s32.totalorder %s917_s11, %s913_s7 }
 0x35d   : > { %p915_p7 = pnand %p914_p5, %p1081_p9 }
 0x35e   : > { %p920_p8 = por %p919_p13, %p918_p10 }
 0x35f   : > { %p916_p6 = pneg %p915_p7 }
 0x361   : > { %p921_p12 = pnand %p920_p8, %p916_p6 }
 0x363   : > { %924 = shalt.err (!%p921_p12)
}
 0x364   : > { %726 = dma.vmem_to_hbm [thread:$0]  (%p1081_p9), %s542_s13, 128, %s539_s26, %s527_s2  }
 0x365 PF: > { %s553_s8 = sand.u32 1, %s965_s18   ;;  %p1263_p0 = scmp.ge.s32.totalorder %s985_s0, 2 }
 0x366   : > { %s554_s24 = scalar_lea.sflag [#allocation9], %s553_s8 }
 0x367   : > { %p739_p1 = pnand %p1263_p0, %p1088_p11 }
 0x369   : > { %p740_p3 = pneg %p739_p1 }
 0x36b   : > { %960 = dma.done.wait (%p740_p3), %s554_s24, 128  }
 0x36c   : > { %962 = vsyncadd (%p740_p3), %s554_s24, 4294967168  ;;  %s27_s0 = sadd.s32 1, %s985_s0   ;;  %s1264_s27 = sld [smem:[#allocation18_spill]] }
 0x36d   : > { %p24_p2 = scmp.ge.s32.totalorder %s27_s0, 4   ;;  %s1265_s20 = sld [smem:[#allocation20_spill]] }
 0x36e   : > { %s1266_s30 = sld [smem:[#allocation19_spill]]  ;;  %s1267_s18 = smov %s969_s19 }
 0x36f   : > { %s1269_s21 = smov %s981_s22 }
 0x370   :  { %26 = sbr.rel (!%p24_p2) target bundleno = 14 (0xe), region = 109 }
 0x372   : > { %s1268_s19 = smov %s1264_s27 }
 0x374   : > { %s1270_s22 = smov %s1266_s30 }
 0x375   :  { %559 = vsyncpa [#allocation8], 1 }
 0x376   :  { %561 = vsyncpa [#allocation8 + $0x1], 1 }
 0x377   :  { %562 = vsyncpa [#allocation11], 1 }
 0x378   :  { %564 = vsyncpa [#allocation11 + $0x1], 1 }
 0x379   :  { %565 = vsyncpa [#allocation9], 1 }
 0x37a   :  { %567 = vsyncpa [#allocation9 + $0x1], 1 }

</bundles_post_ra>
